<compile_context>
chip_gen: v5e
topology: v5e:2x2
jax: 0.10.0
libtpu: 0.0.40
codegen_flags: <defaults>
</compile_context>

<pallas_src>
import jax
import jax.numpy as jnp
from jax.experimental import pallas as pl
from jax.experimental.pallas import tpu as pltpu


def wave_kernel(emb_ref, wg_ref, bg_ref,
                w12_ref, b12_ref,
                g1_ref, beta1_ref,
                wf1_ref, bf1_ref, wf2_ref, bf2_ref,
                g2_ref, beta2_ref,
                wo_ref, bo_ref,
                out_ref):
    B, S, D = emb_ref.shape
    H = wg_ref.shape[1]
    BS = B * S

    emb = emb_ref[...].reshape(BS, D)                      # (B*S, D)

    # global_semantics: Linear(D -> H) on all B*S rows at once.
    hidden = jnp.dot(emb, wg_ref[...],
                     preferred_element_type=jnp.float32) + bg_ref[...]
    hidden3 = hidden.reshape(B, S, H)

    # G = ||hidden||_2 over the sequence axis (torch dim=1, keepdim) -> (B,1,H)
    G = jnp.sqrt(jnp.sum(hidden3 * hidden3, axis=1, keepdims=True))

    # phase: torch does alpha = atan2(sqrt(1 - clamp(r^2, 0.99) + 1e-8), r)
    # then real = G*cos(alpha), imag = G*sin(alpha).  With y > 0:
    #   cos(atan2(y, x)) = x / hypot(x, y),  sin(atan2(y, x)) = y / hypot(x, y)
    ratio = hidden3 / (G + 1e-8)
    r2 = ratio * ratio
    s2 = 1.0 - jnp.minimum(r2, 0.99) + 1e-8                # = y^2, y > 0
    inv_h = jax.lax.rsqrt(r2 + s2)                         # 1 / hypot(x, y)
    cos_a = ratio * inv_h
    sin_a = jnp.sqrt(s2) * inv_h

    real = (G * cos_a).reshape(BS, H)
    imag = (G * sin_a).reshape(BS, H)

    # Fused wave variants: one (2*B*S, H) @ (H, 2H) MXU push.
    ri = jnp.concatenate([real, imag], axis=0)             # (2*BS, H)
    z = jnp.dot(ri, w12_ref[...],
                preferred_element_type=jnp.float32) + b12_ref[...]
    z1r = z[:BS, :H]
    z1i = z[BS:, :H]
    z2r = z[:BS, H:]
    z2i = z[BS:, H:]

    # complex modulation (use_modulation=True path)
    cr = z1r * z2r - z1i * z2i
    ci = z1r * z2i + z1i * z2r
    combined = jnp.sqrt(cr * cr + ci * ci + 1e-8)          # (BS, H)

    # LayerNorm1 over the hidden dim (eps=1e-5, biased variance)
    mu1 = jnp.mean(combined, axis=-1, keepdims=True)
    var1 = jnp.mean((combined - mu1) ** 2, axis=-1, keepdims=True)
    combined = (combined - mu1) * jax.lax.rsqrt(var1 + 1e-5) * g1_ref[...] \
        + beta1_ref[...]

    # mean-pool over the sequence axis -> (B, H)
    pooled = jnp.mean(combined.reshape(B, S, H), axis=1)

    # feed forward: Linear(H->4H) -> ReLU -> Dropout(eval: id) -> Linear(4H->H)
    h1 = jnp.dot(pooled, wf1_ref[...],
                 preferred_element_type=jnp.float32) + bf1_ref[...]
    h1 = jnp.maximum(h1, 0.0)
    ff = jnp.dot(h1, wf2_ref[...],
                 preferred_element_type=jnp.float32) + bf2_ref[...]

    # LayerNorm2
    mu2 = jnp.mean(ff, axis=-1, keepdims=True)
    var2 = jnp.mean((ff - mu2) ** 2, axis=-1, keepdims=True)
    ffn = (ff - mu2) * jax.lax.rsqrt(var2 + 1e-5) * g2_ref[...] + beta2_ref[...]

    # output projection -> full (B, output_dim) block, single writeback
    out_ref[...] = jnp.dot(ffn, wo_ref[...],
                           preferred_element_type=jnp.float32) + bo_ref[...]


def wave_network_forward(embedded, params):
    """embedded: (B, S, D) float32.  Returns logits (B, output_dim)."""
    B, S, D = embedded.shape
    H = params["wg"].shape[1]
    H4 = params["wf1"].shape[1]
    O = params["wo"].shape[1]

    # Fuse the two wave-variant weights along N (wrapper-side, one-time cost)
    # so the kernel issues a single MXU push instead of four small matmuls.
    w12 = jnp.concatenate([params["w1"], params["w2"]], axis=1)   # (H, 2H)
    b12 = jnp.concatenate([params["b1"], params["b2"]], axis=1)   # (1, 2H)

    full = lambda shape: pl.BlockSpec(shape, lambda i: (0,) * len(shape))

    in_specs = [
        full((B, S, D)),                                 # embedded (whole batch)
        full((D, H)), full((1, H)),                      # global_semantics
        full((H, 2 * H)), full((1, 2 * H)),              # fused wave_variant1|2
        full((1, H)), full((1, H)),                      # layer_norm1
        full((H, H4)), full((1, H4)),                    # feed_forward[0]
        full((H4, H)), full((1, H)),                     # feed_forward[3]
        full((1, H)), full((1, H)),                      # layer_norm2
        full((H, O)), full((1, O)),                      # output_layer
    ]

    return pl.pallas_call(
        wave_kernel,
        out_shape=jax.ShapeDtypeStruct((B, O), jnp.float32),
        grid_spec=pltpu.PrefetchScalarGridSpec(
            num_scalar_prefetch=0,
            grid=(1,),                                   # single step: no per-row overhead
            in_specs=in_specs,
            out_specs=pl.BlockSpec((B, O), lambda i: (0, 0)),
        ),
        compiler_params=pltpu.CompilerParams(
            dimension_semantics=("arbitrary",),
        ),
    )(
        embedded,
        params["wg"], params["bg"],
        w12, b12,
        params["ln1_g"], params["ln1_b"],
        params["wf1"], params["bf1"],
        params["wf2"], params["bf2"],
        params["ln2_g"], params["ln2_b"],
        params["wo"], params["bo"],
    )


def wave_network_reference(embedded, params):
    """Pure-JAX reference mirroring the torch forward (eval mode)."""
    hidden = embedded @ params["wg"] + params["bg"]                  # (B,S,H)
    G = jnp.sqrt(jnp.sum(hidden ** 2, axis=1, keepdims=True))        # (B,1,H)
    ratio = hidden / (G + 1e-8)
    sq = jnp.minimum(ratio ** 2, 0.99)
    alpha = jnp.arctan2(jnp.sqrt(1.0 - sq + 1e-8), ratio)
    real = G * jnp.cos(alpha)
    imag = G * jnp.sin(alpha)
    z1r = real @ params["w1"] + params["b1"]
    z1i = imag @ params["w1"] + params["b1"]
    z2r = real @ params["w2"] + params["b2"]
    z2i = imag @ params["w2"] + params["b2"]
    cr = z1r * z2r - z1i * z2i
    ci = z1r * z2i + z1i * z2r
    combined = jnp.sqrt(cr ** 2 + ci ** 2 + 1e-8)
    mu = combined.mean(-1, keepdims=True)
    var = ((combined - mu) ** 2).mean(-1, keepdims=True)
    combined = (combined - mu) / jnp.sqrt(var + 1e-5) * params["ln1_g"] + params["ln1_b"]
    pooled = combined.mean(axis=1)
    h1 = jnp.maximum(pooled @ params["wf1"] + params["bf1"], 0.0)
    ff = h1 @ params["wf2"] + params["bf2"]
    mu2 = ff.mean(-1, keepdims=True)
    var2 = ((ff - mu2) ** 2).mean(-1, keepdims=True)
    ffn = (ff - mu2) / jnp.sqrt(var2 + 1e-5) * params["ln2_g"] + params["ln2_b"]
    return ffn @ params["wo"] + params["bo"]


def make_params(key, vocab, D, H, O):
    ks = jax.random.split(key, 8)

    def lin(k, fan_in, shape):
        return (1.0 / jnp.sqrt(fan_in)) * jax.random.normal(k, shape, jnp.float32)

    return {
        "emb_table": jax.random.normal(ks[0], (vocab, D), jnp.float32),
        "wg": lin(ks[1], D, (D, H)),
        "bg": jnp.zeros((1, H), jnp.float32),
        "w1": lin(ks[2], H, (H, H)),
        "b1": jnp.zeros((1, H), jnp.float32),
        "w2": lin(ks[3], H, (H, H)),
        "b2": jnp.zeros((1, H), jnp.float32),
        "ln1_g": jnp.ones((1, H), jnp.float32),
        "ln1_b": jnp.zeros((1, H), jnp.float32),
        "wf1": lin(ks[4], H, (H, 4 * H)),
        "bf1": jnp.zeros((1, 4 * H), jnp.float32),
        "wf2": lin(ks[5], 4 * H, (4 * H, H)),
        "bf2": jnp.zeros((1, H), jnp.float32),
        "ln2_g": jnp.ones((1, H), jnp.float32),
        "ln2_b": jnp.zeros((1, H), jnp.float32),
        "wo": lin(ks[6], H, (H, O)),
        "bo": jnp.zeros((1, O), jnp.float32),
    }


if __name__ == "__main__":
    # Small shapes consistent with the module's forward:
    #   tokens x: (batch=2, seq=8) int32, input_dim=128, hidden=32, output=4
    B, S, D, H, O = 2, 8, 128, 32, 4
    VOCAB = 1000

    key = jax.random.PRNGKey(0)
    k_tok, k_par = jax.random.split(key)

    params = make_params(k_par, VOCAB, D, H, O)
    tokens = jax.random.randint(k_tok, (B, S), 0, VOCAB, dtype=jnp.int32)

    # Glue: embedding gather (nn.Embedding) done in plain JAX.
    embedded = jnp.take(params["emb_table"], tokens, axis=0)  # (B, S, D) f32

    logits = wave_network_forward(embedded, params)
    jax.block_until_ready(logits)

    assert logits.shape == (B, O) and logits.dtype == jnp.float32

    ref = wave_network_reference(embedded, params)
    err = float(jnp.max(jnp.abs(logits - ref)))
    assert err < 2e-3, f"max abs error vs reference: {err}"

    print("KERNEL_OK")
</pallas_src>

<mosaic_0001>
module attributes {stable_mosaic.version = 11 : i64} {
  func.func @wave_kernel(%arg0: i32, %arg1: memref<2x8x128xf32, #tpu.memory_space<vmem>>, %arg2: memref<128x32xf32, #tpu.memory_space<vmem>>, %arg3: memref<1x32xf32, #tpu.memory_space<vmem>>, %arg4: memref<32x64xf32, #tpu.memory_space<vmem>>, %arg5: memref<1x64xf32, #tpu.memory_space<vmem>>, %arg6: memref<1x32xf32, #tpu.memory_space<vmem>>, %arg7: memref<1x32xf32, #tpu.memory_space<vmem>>, %arg8: memref<32x128xf32, #tpu.memory_space<vmem>>, %arg9: memref<1x128xf32, #tpu.memory_space<vmem>>, %arg10: memref<128x32xf32, #tpu.memory_space<vmem>>, %arg11: memref<1x32xf32, #tpu.memory_space<vmem>>, %arg12: memref<1x32xf32, #tpu.memory_space<vmem>>, %arg13: memref<1x32xf32, #tpu.memory_space<vmem>>, %arg14: memref<32x4xf32, #tpu.memory_space<vmem>>, %arg15: memref<1x4xf32, #tpu.memory_space<vmem>>, %arg16: memref<2x4xf32, #tpu.memory_space<vmem>>) attributes {dimension_semantics = [#tpu.dimension_semantics<arbitrary>], iteration_bounds = array<i64: 1>, scalar_prefetch = 0 : i64, scratch_operands = 0 : i64, tpu.core_type = #tpu.core_type<tc>, window_params = [{pipeline_mode = #tpu.pipeline_mode<synchronous>, transform_indices = @transform_0, window_bounds = array<i64: 2, 8, 128>}, {pipeline_mode = #tpu.pipeline_mode<synchronous>, transform_indices = @transform_1, window_bounds = array<i64: 128, 32>}, {pipeline_mode = #tpu.pipeline_mode<synchronous>, transform_indices = @transform_2, window_bounds = array<i64: 1, 32>}, {pipeline_mode = #tpu.pipeline_mode<synchronous>, transform_indices = @transform_3, window_bounds = array<i64: 32, 64>}, {pipeline_mode = #tpu.pipeline_mode<synchronous>, transform_indices = @transform_4, window_bounds = array<i64: 1, 64>}, {pipeline_mode = #tpu.pipeline_mode<synchronous>, transform_indices = @transform_5, window_bounds = array<i64: 1, 32>}, {pipeline_mode = #tpu.pipeline_mode<synchronous>, transform_indices = @transform_6, window_bounds = array<i64: 1, 32>}, {pipeline_mode = #tpu.pipeline_mode<synchronous>, transform_indices = @transform_7, window_bounds = array<i64: 32, 128>}, {pipeline_mode = #tpu.pipeline_mode<synchronous>, transform_indices = @transform_8, window_bounds = array<i64: 1, 128>}, {pipeline_mode = #tpu.pipeline_mode<synchronous>, transform_indices = @transform_9, window_bounds = array<i64: 128, 32>}, {pipeline_mode = #tpu.pipeline_mode<synchronous>, transform_indices = @transform_10, window_bounds = array<i64: 1, 32>}, {pipeline_mode = #tpu.pipeline_mode<synchronous>, transform_indices = @transform_11, window_bounds = array<i64: 1, 32>}, {pipeline_mode = #tpu.pipeline_mode<synchronous>, transform_indices = @transform_12, window_bounds = array<i64: 1, 32>}, {pipeline_mode = #tpu.pipeline_mode<synchronous>, transform_indices = @transform_13, window_bounds = array<i64: 32, 4>}, {pipeline_mode = #tpu.pipeline_mode<synchronous>, transform_indices = @transform_14, window_bounds = array<i64: 1, 4>}, {pipeline_mode = #tpu.pipeline_mode<synchronous>, transform_indices = @transform_15, window_bounds = array<i64: 2, 4>}]} {
    %c0 = arith.constant 0 : index
    %c0_0 = arith.constant 0 : index
    %c0_1 = arith.constant 0 : index
    %0 = vector.load %arg1[%c0, %c0_0, %c0_1] : memref<2x8x128xf32, #tpu.memory_space<vmem>>, vector<2x8x128xf32>
    %1 = vector.shape_cast %0 : vector<2x8x128xf32> to vector<16x128xf32>
    %c0_2 = arith.constant 0 : index
    %c0_3 = arith.constant 0 : index
    %2 = vector.load %arg2[%c0_2, %c0_3] : memref<128x32xf32, #tpu.memory_space<vmem>>, vector<128x32xf32>
    %cst = arith.constant dense<0.000000e+00> : vector<16x32xf32>
    %3 = tpu.matmul %1, %2, %cst {dimension_numbers = #tpu.dot_dimension_numbers<[1], [0], [0], [1], [0, 0, 1, 1], [], []>} : vector<16x128xf32>, vector<128x32xf32>, vector<16x32xf32> -> vector<16x32xf32>
    %c0_4 = arith.constant 0 : index
    %c0_5 = arith.constant 0 : index
    %4 = vector.load %arg3[%c0_4, %c0_5] : memref<1x32xf32, #tpu.memory_space<vmem>>, vector<1x32xf32>
    %5 = vector.broadcast %4 : vector<1x32xf32> to vector<16x32xf32>
    %6 = arith.addf %3, %5 : vector<16x32xf32>
    %7 = vector.shape_cast %6 : vector<16x32xf32> to vector<2x8x32xf32>
    %8 = arith.mulf %7, %7 : vector<2x8x32xf32>
    %cst_6 = arith.constant dense<0.000000e+00> : vector<2x32xf32>
    %9 = vector.multi_reduction <add>, %8, %cst_6 [1] : vector<2x8x32xf32> to vector<2x32xf32>
    %10 = vector.shape_cast %9 : vector<2x32xf32> to vector<2x1x32xf32>
    %11 = math.sqrt %10 : vector<2x1x32xf32>
    %cst_7 = arith.constant 9.99999993E-9 : f32
    %12 = vector.broadcast %cst_7 : f32 to vector<2x1x32xf32>
    %13 = arith.addf %11, %12 : vector<2x1x32xf32>
    %14 = vector.broadcast %13 : vector<2x1x32xf32> to vector<2x8x32xf32>
    %15 = arith.divf %7, %14 : vector<2x8x32xf32>
    %16 = arith.mulf %15, %15 : vector<2x8x32xf32>
    %cst_8 = arith.constant 9.900000e-01 : f32
    %17 = vector.broadcast %cst_8 : f32 to vector<2x8x32xf32>
    %18 = arith.minimumf %16, %17 : vector<2x8x32xf32>
    %cst_9 = arith.constant 1.000000e+00 : f32
    %19 = vector.broadcast %cst_9 : f32 to vector<2x8x32xf32>
    %20 = arith.subf %19, %18 : vector<2x8x32xf32>
    %cst_10 = arith.constant 9.99999993E-9 : f32
    %21 = vector.broadcast %cst_10 : f32 to vector<2x8x32xf32>
    %22 = arith.addf %20, %21 : vector<2x8x32xf32>
    %23 = arith.addf %16, %22 : vector<2x8x32xf32>
    %24 = math.rsqrt %23 : vector<2x8x32xf32>
    %25 = arith.mulf %15, %24 : vector<2x8x32xf32>
    %26 = math.sqrt %22 : vector<2x8x32xf32>
    %27 = arith.mulf %26, %24 : vector<2x8x32xf32>
    %28 = vector.broadcast %11 : vector<2x1x32xf32> to vector<2x8x32xf32>
    %29 = arith.mulf %28, %25 : vector<2x8x32xf32>
    %30 = vector.shape_cast %29 : vector<2x8x32xf32> to vector<16x32xf32>
    %31 = vector.broadcast %11 : vector<2x1x32xf32> to vector<2x8x32xf32>
    %32 = arith.mulf %31, %27 : vector<2x8x32xf32>
    %33 = vector.shape_cast %32 : vector<2x8x32xf32> to vector<16x32xf32>
    %34 = tpu.concatenate %30, %33 in 0 : vector<16x32xf32>, vector<16x32xf32> -> vector<32x32xf32>
    %c0_11 = arith.constant 0 : index
    %c0_12 = arith.constant 0 : index
    %35 = vector.load %arg4[%c0_11, %c0_12] : memref<32x64xf32, #tpu.memory_space<vmem>>, vector<32x64xf32>
    %cst_13 = arith.constant dense<0.000000e+00> : vector<32x64xf32>
    %36 = tpu.matmul %34, %35, %cst_13 {dimension_numbers = #tpu.dot_dimension_numbers<[1], [0], [0], [1], [0, 0, 1, 1], [], []>} : vector<32x32xf32>, vector<32x64xf32>, vector<32x64xf32> -> vector<32x64xf32>
    %c0_14 = arith.constant 0 : index
    %c0_15 = arith.constant 0 : index
    %37 = vector.load %arg5[%c0_14, %c0_15] : memref<1x64xf32, #tpu.memory_space<vmem>>, vector<1x64xf32>
    %38 = vector.broadcast %37 : vector<1x64xf32> to vector<32x64xf32>
    %39 = arith.addf %36, %38 : vector<32x64xf32>
    %40 = vector.extract_strided_slice %39 {offsets = [0, 0], sizes = [16, 32], strides = [1, 1]} : vector<32x64xf32> to vector<16x32xf32>
    %41 = vector.extract_strided_slice %39 {offsets = [16, 0], sizes = [16, 32], strides = [1, 1]} : vector<32x64xf32> to vector<16x32xf32>
    %42 = vector.extract_strided_slice %39 {offsets = [0, 32], sizes = [16, 32], strides = [1, 1]} : vector<32x64xf32> to vector<16x32xf32>
    %43 = vector.extract_strided_slice %39 {offsets = [16, 32], sizes = [16, 32], strides = [1, 1]} : vector<32x64xf32> to vector<16x32xf32>
    %44 = arith.mulf %40, %42 : vector<16x32xf32>
    %45 = arith.mulf %41, %43 : vector<16x32xf32>
    %46 = arith.subf %44, %45 : vector<16x32xf32>
    %47 = arith.mulf %40, %43 : vector<16x32xf32>
    %48 = arith.mulf %41, %42 : vector<16x32xf32>
    %49 = arith.addf %47, %48 : vector<16x32xf32>
    %50 = arith.mulf %46, %46 : vector<16x32xf32>
    %51 = arith.mulf %49, %49 : vector<16x32xf32>
    %52 = arith.addf %50, %51 : vector<16x32xf32>
    %cst_16 = arith.constant 9.99999993E-9 : f32
    %53 = vector.broadcast %cst_16 : f32 to vector<16x32xf32>
    %54 = arith.addf %52, %53 : vector<16x32xf32>
    %55 = math.sqrt %54 : vector<16x32xf32>
    %cst_17 = arith.constant dense<0.000000e+00> : vector<16xf32>
    %56 = vector.multi_reduction <add>, %55, %cst_17 [1] : vector<16x32xf32> to vector<16xf32>
    %57 = vector.shape_cast %56 : vector<16xf32> to vector<16x1xf32>
    %cst_18 = arith.constant 3.200000e+01 : f32
    %58 = vector.broadcast %cst_18 : f32 to vector<16x1xf32>
    %59 = arith.divf %57, %58 : vector<16x1xf32>
    %60 = vector.broadcast %59 : vector<16x1xf32> to vector<16x32xf32>
    %61 = arith.subf %55, %60 : vector<16x32xf32>
    %62 = arith.mulf %61, %61 : vector<16x32xf32>
    %cst_19 = arith.constant dense<0.000000e+00> : vector<16xf32>
    %63 = vector.multi_reduction <add>, %62, %cst_19 [1] : vector<16x32xf32> to vector<16xf32>
    %64 = vector.shape_cast %63 : vector<16xf32> to vector<16x1xf32>
    %cst_20 = arith.constant 3.200000e+01 : f32
    %65 = vector.broadcast %cst_20 : f32 to vector<16x1xf32>
    %66 = arith.divf %64, %65 : vector<16x1xf32>
    %67 = vector.broadcast %59 : vector<16x1xf32> to vector<16x32xf32>
    %68 = arith.subf %55, %67 : vector<16x32xf32>
    %cst_21 = arith.constant 9.99999974E-6 : f32
    %69 = vector.broadcast %cst_21 : f32 to vector<16x1xf32>
    %70 = arith.addf %66, %69 : vector<16x1xf32>
    %71 = math.rsqrt %70 : vector<16x1xf32>
    %72 = vector.broadcast %71 : vector<16x1xf32> to vector<16x32xf32>
    %73 = arith.mulf %68, %72 : vector<16x32xf32>
    %c0_22 = arith.constant 0 : index
    %c0_23 = arith.constant 0 : index
    %74 = vector.load %arg6[%c0_22, %c0_23] : memref<1x32xf32, #tpu.memory_space<vmem>>, vector<1x32xf32>
    %75 = vector.broadcast %74 : vector<1x32xf32> to vector<16x32xf32>
    %76 = arith.mulf %73, %75 : vector<16x32xf32>
    %c0_24 = arith.constant 0 : index
    %c0_25 = arith.constant 0 : index
    %77 = vector.load %arg7[%c0_24, %c0_25] : memref<1x32xf32, #tpu.memory_space<vmem>>, vector<1x32xf32>
    %78 = vector.broadcast %77 : vector<1x32xf32> to vector<16x32xf32>
    %79 = arith.addf %76, %78 : vector<16x32xf32>
    %80 = vector.shape_cast %79 : vector<16x32xf32> to vector<2x8x32xf32>
    %cst_26 = arith.constant dense<0.000000e+00> : vector<2x32xf32>
    %81 = vector.multi_reduction <add>, %80, %cst_26 [1] : vector<2x8x32xf32> to vector<2x32xf32>
    %cst_27 = arith.constant 8.000000e+00 : f32
    %82 = vector.broadcast %cst_27 : f32 to vector<2x32xf32>
    %83 = arith.divf %81, %82 : vector<2x32xf32>
    %c0_28 = arith.constant 0 : index
    %c0_29 = arith.constant 0 : index
    %84 = vector.load %arg8[%c0_28, %c0_29] : memref<32x128xf32, #tpu.memory_space<vmem>>, vector<32x128xf32>
    %cst_30 = arith.constant dense<0.000000e+00> : vector<2x128xf32>
    %85 = tpu.matmul %83, %84, %cst_30 {dimension_numbers = #tpu.dot_dimension_numbers<[1], [0], [0], [1], [0, 0, 1, 1], [], []>} : vector<2x32xf32>, vector<32x128xf32>, vector<2x128xf32> -> vector<2x128xf32>
    %c0_31 = arith.constant 0 : index
    %c0_32 = arith.constant 0 : index
    %86 = vector.load %arg9[%c0_31, %c0_32] : memref<1x128xf32, #tpu.memory_space<vmem>>, vector<1x128xf32>
    %87 = vector.broadcast %86 : vector<1x128xf32> to vector<2x128xf32>
    %88 = arith.addf %85, %87 : vector<2x128xf32>
    %cst_33 = arith.constant 0.000000e+00 : f32
    %89 = vector.broadcast %cst_33 : f32 to vector<2x128xf32>
    %90 = arith.maximumf %88, %89 : vector<2x128xf32>
    %c0_34 = arith.constant 0 : index
    %c0_35 = arith.constant 0 : index
    %91 = vector.load %arg10[%c0_34, %c0_35] : memref<128x32xf32, #tpu.memory_space<vmem>>, vector<128x32xf32>
    %cst_36 = arith.constant dense<0.000000e+00> : vector<2x32xf32>
    %92 = tpu.matmul %90, %91, %cst_36 {dimension_numbers = #tpu.dot_dimension_numbers<[1], [0], [0], [1], [0, 0, 1, 1], [], []>} : vector<2x128xf32>, vector<128x32xf32>, vector<2x32xf32> -> vector<2x32xf32>
    %c0_37 = arith.constant 0 : index
    %c0_38 = arith.constant 0 : index
    %93 = vector.load %arg11[%c0_37, %c0_38] : memref<1x32xf32, #tpu.memory_space<vmem>>, vector<1x32xf32>
    %94 = vector.broadcast %93 : vector<1x32xf32> to vector<2x32xf32>
    %95 = arith.addf %92, %94 : vector<2x32xf32>
    %cst_39 = arith.constant dense<0.000000e+00> : vector<2xf32>
    %96 = vector.multi_reduction <add>, %95, %cst_39 [1] : vector<2x32xf32> to vector<2xf32>
    %97 = vector.shape_cast %96 : vector<2xf32> to vector<2x1xf32>
    %cst_40 = arith.constant 3.200000e+01 : f32
    %98 = vector.broadcast %cst_40 : f32 to vector<2x1xf32>
    %99 = arith.divf %97, %98 : vector<2x1xf32>
    %100 = vector.broadcast %99 : vector<2x1xf32> to vector<2x32xf32>
    %101 = arith.subf %95, %100 : vector<2x32xf32>
    %102 = arith.mulf %101, %101 : vector<2x32xf32>
    %cst_41 = arith.constant dense<0.000000e+00> : vector<2xf32>
    %103 = vector.multi_reduction <add>, %102, %cst_41 [1] : vector<2x32xf32> to vector<2xf32>
    %104 = vector.shape_cast %103 : vector<2xf32> to vector<2x1xf32>
    %cst_42 = arith.constant 3.200000e+01 : f32
    %105 = vector.broadcast %cst_42 : f32 to vector<2x1xf32>
    %106 = arith.divf %104, %105 : vector<2x1xf32>
    %107 = vector.broadcast %99 : vector<2x1xf32> to vector<2x32xf32>
    %108 = arith.subf %95, %107 : vector<2x32xf32>
    %cst_43 = arith.constant 9.99999974E-6 : f32
    %109 = vector.broadcast %cst_43 : f32 to vector<2x1xf32>
    %110 = arith.addf %106, %109 : vector<2x1xf32>
    %111 = math.rsqrt %110 : vector<2x1xf32>
    %112 = vector.broadcast %111 : vector<2x1xf32> to vector<2x32xf32>
    %113 = arith.mulf %108, %112 : vector<2x32xf32>
    %c0_44 = arith.constant 0 : index
    %c0_45 = arith.constant 0 : index
    %114 = vector.load %arg12[%c0_44, %c0_45] : memref<1x32xf32, #tpu.memory_space<vmem>>, vector<1x32xf32>
    %115 = vector.broadcast %114 : vector<1x32xf32> to vector<2x32xf32>
    %116 = arith.mulf %113, %115 : vector<2x32xf32>
    %c0_46 = arith.constant 0 : index
    %c0_47 = arith.constant 0 : index
    %117 = vector.load %arg13[%c0_46, %c0_47] : memref<1x32xf32, #tpu.memory_space<vmem>>, vector<1x32xf32>
    %118 = vector.broadcast %117 : vector<1x32xf32> to vector<2x32xf32>
    %119 = arith.addf %116, %118 : vector<2x32xf32>
    %c0_48 = arith.constant 0 : index
    %c0_49 = arith.constant 0 : index
    %120 = vector.load %arg14[%c0_48, %c0_49] : memref<32x4xf32, #tpu.memory_space<vmem>>, vector<32x4xf32>
    %cst_50 = arith.constant dense<0.000000e+00> : vector<2x4xf32>
    %121 = tpu.matmul %119, %120, %cst_50 {dimension_numbers = #tpu.dot_dimension_numbers<[1], [0], [0], [1], [0, 0, 1, 1], [], []>} : vector<2x32xf32>, vector<32x4xf32>, vector<2x4xf32> -> vector<2x4xf32>
    %c0_51 = arith.constant 0 : index
    %c0_52 = arith.constant 0 : index
    %122 = vector.load %arg15[%c0_51, %c0_52] : memref<1x4xf32, #tpu.memory_space<vmem>>, vector<1x4xf32>
    %123 = vector.broadcast %122 : vector<1x4xf32> to vector<2x4xf32>
    %124 = arith.addf %121, %123 : vector<2x4xf32>
    %c0_53 = arith.constant 0 : index
    %c0_54 = arith.constant 0 : index
    %125 = vector.load %arg16[%c0_53, %c0_54] : memref<2x4xf32, #tpu.memory_space<vmem>>, vector<2x4xf32>
    tpu.vector_store %arg16[%c0_53, %c0_54], %124 {strides = array<i32>} : memref<2x4xf32, #tpu.memory_space<vmem>>, vector<2x4xf32>,
    return
  }
  func.func @transform_0(%arg0: i32) -> (i32, i32, i32) {
    %c0_i32 = arith.constant 0 : i32
    %c0_i32_0 = arith.constant 0 : i32
    %c0_i32_1 = arith.constant 0 : i32
    %c0_i32_2 = arith.constant 0 : i32
    return %c0_i32, %c0_i32_0, %c0_i32_1 : i32, i32, i32
  }
  func.func @transform_1(%arg0: i32) -> (i32, i32) {
    %c0_i32 = arith.constant 0 : i32
    %c0_i32_0 = arith.constant 0 : i32
    %c0_i32_1 = arith.constant 0 : i32
    return %c0_i32, %c0_i32_0 : i32, i32
  }
  func.func @transform_2(%arg0: i32) -> (i32, i32) {
    %c0_i32 = arith.constant 0 : i32
    %c0_i32_0 = arith.constant 0 : i32
    %c0_i32_1 = arith.constant 0 : i32
    return %c0_i32, %c0_i32_0 : i32, i32
  }
  func.func @transform_3(%arg0: i32) -> (i32, i32) {
    %c0_i32 = arith.constant 0 : i32
    %c0_i32_0 = arith.constant 0 : i32
    %c0_i32_1 = arith.constant 0 : i32
    return %c0_i32, %c0_i32_0 : i32, i32
  }
  func.func @transform_4(%arg0: i32) -> (i32, i32) {
    %c0_i32 = arith.constant 0 : i32
    %c0_i32_0 = arith.constant 0 : i32
    %c0_i32_1 = arith.constant 0 : i32
    return %c0_i32, %c0_i32_0 : i32, i32
  }
  func.func @transform_5(%arg0: i32) -> (i32, i32) {
    %c0_i32 = arith.constant 0 : i32
    %c0_i32_0 = arith.constant 0 : i32
    %c0_i32_1 = arith.constant 0 : i32
    return %c0_i32, %c0_i32_0 : i32, i32
  }
  func.func @transform_6(%arg0: i32) -> (i32, i32) {
    %c0_i32 = arith.constant 0 : i32
    %c0_i32_0 = arith.constant 0 : i32
    %c0_i32_1 = arith.constant 0 : i32
    return %c0_i32, %c0_i32_0 : i32, i32
  }
  func.func @transform_7(%arg0: i32) -> (i32, i32) {
    %c0_i32 = arith.constant 0 : i32
    %c0_i32_0 = arith.constant 0 : i32
    %c0_i32_1 = arith.constant 0 : i32
    return %c0_i32, %c0_i32_0 : i32, i32
  }
  func.func @transform_8(%arg0: i32) -> (i32, i32) {
    %c0_i32 = arith.constant 0 : i32
    %c0_i32_0 = arith.constant 0 : i32
    %c0_i32_1 = arith.constant 0 : i32
    return %c0_i32, %c0_i32_0 : i32, i32
  }
  func.func @transform_9(%arg0: i32) -> (i32, i32) {
    %c0_i32 = arith.constant 0 : i32
    %c0_i32_0 = arith.constant 0 : i32
    %c0_i32_1 = arith.constant 0 : i32
    return %c0_i32, %c0_i32_0 : i32, i32
  }
  func.func @transform_10(%arg0: i32) -> (i32, i32) {
    %c0_i32 = arith.constant 0 : i32
    %c0_i32_0 = arith.constant 0 : i32
    %c0_i32_1 = arith.constant 0 : i32
    return %c0_i32, %c0_i32_0 : i32, i32
  }
  func.func @transform_11(%arg0: i32) -> (i32, i32) {
    %c0_i32 = arith.constant 0 : i32
    %c0_i32_0 = arith.constant 0 : i32
    %c0_i32_1 = arith.constant 0 : i32
    return %c0_i32, %c0_i32_0 : i32, i32
  }
  func.func @transform_12(%arg0: i32) -> (i32, i32) {
    %c0_i32 = arith.constant 0 : i32
    %c0_i32_0 = arith.constant 0 : i32
    %c0_i32_1 = arith.constant 0 : i32
    return %c0_i32, %c0_i32_0 : i32, i32
  }
  func.func @transform_13(%arg0: i32) -> (i32, i32) {
    %c0_i32 = arith.constant 0 : i32
    %c0_i32_0 = arith.constant 0 : i32
    %c0_i32_1 = arith.constant 0 : i32
    return %c0_i32, %c0_i32_0 : i32, i32
  }
  func.func @transform_14(%arg0: i32) -> (i32, i32) {
    %c0_i32 = arith.constant 0 : i32
    %c0_i32_0 = arith.constant 0 : i32
    %c0_i32_1 = arith.constant 0 : i32
    return %c0_i32, %c0_i32_0 : i32, i32
  }
  func.func @transform_15(%arg0: i32) -> (i32, i32) {
    %c0_i32 = arith.constant 0 : i32
    %c0_i32_0 = arith.constant 0 : i32
    %c0_i32_1 = arith.constant 0 : i32
    return %c0_i32, %c0_i32_0 : i32, i32
  }
}

</mosaic_0001>

<bundles_post_ra>
// kernel: tpu_custom_call.1
= control target key start
LH: loop header
LB: loop body
LE: loop exit
PB: predicated region body
PF: predicated region fallthrough
CT: control target
= control target key end

     0   :  { %s952_s0 = inlined_call_operand.vmem [shape: f32[2,8,128], index: 0, kind: input, shape index: {}]   ;;  %s953_s1 = inlined_call_operand.vmem [shape: f32[128,32], index: 1, kind: input, shape index: {}]   ;;  %s954_s2 = inlined_call_operand.vmem [shape: f32[1,32], index: 2, kind: input, shape index: {}]   ;;  %s955_s3 = inlined_call_operand.vmem [shape: f32[32,64], index: 3, kind: input, shape index: {}]   ;;  %s956_s4 = inlined_call_operand.vmem [shape: f32[1,64], index: 4, kind: input, shape index: {}]   ;;  %s957_s5 = inlined_call_operand.vmem [shape: f32[1,32], index: 5, kind: input, shape index: {}]   ;;  %s958_s6 = inlined_call_operand.vmem [shape: f32[1,32], index: 6, kind: input, shape index: {}]   ;;  %s959_s7 = inlined_call_operand.vmem [shape: f32[32,128], index: 7, kind: input, shape index: {}]   ;;  %s960_s8 = inlined_call_operand.vmem [shape: f32[1,128], index: 8, kind: input, shape index: {}]   ;;  %s961_s9 = inlined_call_operand.vmem [shape: f32[128,32], index: 9, kind: input, shape index: {}]   ;;  %s962_s10 = inlined_call_operand.vmem [shape: f32[1,32], index: 10, kind: input, shape index: {}]   ;;  %s963_s11 = inlined_call_operand.vmem [shape: f32[1,32], index: 11, kind: input, shape index: {}]   ;;  %s964_s12 = inlined_call_operand.vmem [shape: f32[1,32], index: 12, kind: input, shape index: {}]   ;;  %s965_s13 = inlined_call_operand.vmem [shape: f32[32,4], index: 13, kind: input, shape index: {}]   ;;  %s966_s14 = inlined_call_operand.vmem [shape: f32[1,4], index: 14, kind: input, shape index: {}]   ;;  %s967_s15 = inlined_call_operand.hbm [shape: f32[2,4], index: 15, kind: output, shape index: {}]  }
   0x1   :  { %v68_v0 = vld [vmem:[%s953_s1 + $0x78] sm:$0xff]  ;;  %v67_v1 = vld [vmem:[%s953_s1 + $0x70] sm:$0xff]  ;;  %v66_v2 = vld [vmem:[%s953_s1 + $0x68] sm:$0xff] }
   0x2   :  { %73 = vmatpush.msra.mxu0 %v68_v0  ;;  %v65_v3 = vld [vmem:[%s953_s1 + $0x60] sm:$0xff]  ;;  %v64_v4 = vld [vmem:[%s953_s1 + $0x58] sm:$0xff]  ;;  %v63_v5 = vld [vmem:[%s953_s1 + $0x50] sm:$0xff] }
   0x4   :  { %74 = vmatpush.msra.mxu0 %v67_v1 }
   0x6   :  { %75 = vmatpush.msra.mxu0 %v66_v2 }
   0x8   :  { %76 = vmatpush.msra.mxu0 %v65_v3 }
   0xa   :  { %77 = vmatpush.msra.mxu0 %v64_v4 }
   0xb   :  { %20 = vsyncpa [#allocation3], 0  ;;  %v62_v6 = vld [vmem:[%s953_s1 + $0x48] sm:$0xff]  ;;  %v61_v7 = vld [vmem:[%s953_s1 + $0x40] sm:$0xff]  ;;  %vm98_vm0 = vcmask 261120   ;;  %s658_s17 = smov 96  }
   0xc   :  { %78 = vmatpush.msra.mxu0 %v63_v5  ;;  %v60_v8 = vld [vmem:[%s953_s1 + $0x38] sm:$0xff]  ;;  %v59_v9 = vld [vmem:[%s953_s1 + $0x30] sm:$0xff]  ;;  %v58_v10 = vld [vmem:[%s953_s1 + $0x28] sm:$0xff] }
   0xd   :  { %v57_v11 = vld [vmem:[%s953_s1 + $0x20] sm:$0xff]  ;;  %v56_v12 = vld [vmem:[%s953_s1 + $0x18] sm:$0xff]  ;;  %v55_v13 = vld [vmem:[%s953_s1 + $0x10] sm:$0xff] }
   0xe   :  { %79 = vmatpush.msra.mxu0 %v62_v6  ;;  %v54_v14 = vld [vmem:[%s953_s1 + $0x8] sm:$0xff]  ;;  %v53_v15 = vld [vmem:[%s953_s1] sm:$0xff]  ;;  %v234_v4 = vld [vmem:[%s955_s3 + $0x18] sm:$0xff] }
   0xf   :  { %v51_v16 = vld [vmem:[%s952_s0] sm:$0xff]  ;;  %v52_v17 = vld [vmem:[%s952_s0 + $0x8] sm:$0xff]  ;;  %263 = vmatpush.msra.mxu1 %v234_v4 }
  0x10   :  { %80 = vmatpush.msra.mxu0 %v61_v7  ;;  %v593_v18 = vld [vmem:[%s954_s2] ss:$0 sm:$0xff]  ;;  %s661_s2 = smov [#allocation2]  }
  0x11   :  { %s572_s26 = sshll.u32 %s661_s2, 4  ;;  %s573_s26 = int_to_ptr.vmem [resolvable:$true] %s572_s26 }
  0x12   :  { %81 = vmatpush.msra.mxu0 %v60_v8  ;;  %v233_v8 = vld [vmem:[%s955_s3 + $0x10] sm:$0xff] }
  0x13   :  { %264 = vmatpush.msra.mxu1 %v233_v8 }
  0x14   :  { %82 = vmatpush.msra.mxu0 %v59_v9 }
  0x16   :  { %83 = vmatpush.msra.mxu0 %v58_v10 }
  0x18   :  { %84 = vmatpush.msra.mxu0 %v57_v11 }
  0x1a   :  { %85 = vmatpush.msra.mxu0 %v56_v12  ;;  %v232_v12 = vld [vmem:[%s955_s3 + $0x8] sm:$0xff] }
  0x1b   :  { %265 = vmatpush.msra.mxu1 %v232_v12 }
  0x1c   :  { %86 = vmatpush.msra.mxu0 %v55_v13 }
  0x1e   :  { %87 = vmatpush.msra.mxu0 %v54_v14 }
  0x20   :  { %88 = vmatpush.msra.mxu0 %v53_v15 }
  0x21   :  { %89 = vmatmul.f32.vlgmr.msra.gmra.mxu0 %v51_v16  ;;  %v231_v16 = vld [vmem:[%s955_s3] sm:$0xff] }
  0x22   :  { %266 = vmatpush.msra.mxu1 %v231_v16 }
  0x29   :  { %92 = vmatmul.f32.gmra.mxu0 %v52_v17 }
  0x9e   :  { %v90_v19 = vpop.f32.mrf.mxu0 }
  0x9f   :  { %v799_v20 = vadd.f32 %v593_v18, %v90_v19 }
  0xa1   :  { %v96_v21 = vmul.f32 %v799_v20, %v799_v20 }
  0xa3   :  { %v99_v22 = vsel %vm98_vm0, %v96_v21, 0.0 }
  0xa4   :  { %v100_v23 = vrot.slane %v99_v22, 4 }
  0xa6   :  { %v101_v24 = vadd.f32 %v100_v23, %v99_v22  ;;  %v93_v25 = vpop.f32.mrf.mxu0 }
  0xa7   :  { %v804_v26 = vadd.f32 %v593_v18, %v93_v25 }
  0xa8   :  { %v102_v27 = vrot.slane %v101_v24, 2 }
  0xa9   :  { %v97_v28 = vmul.f32 %v804_v26, %v804_v26 }
  0xaa   :  { %v103_v29 = vadd.f32 %v102_v27, %v101_v24 }
  0xab   :  { %v106_v30 = vsel %vm98_vm0, %v97_v28, 0.0 }
  0xac   :  { %v104_v31 = vrot.slane %v103_v29, 1  ;;  %v107_v32 = vrot.slane %v106_v30, 4 }
  0xae   :  { %v105_v33 = vadd.f32 %v104_v31, %v103_v29  ;;  %v108_v34 = vadd.f32 %v107_v32, %v106_v30 }
  0xb0   :  { %602 = vrsqrt.f32 %v105_v33  ;;  %v109_v35 = vrot.slane %v108_v34, 2  ;;  %vm120_vm1 = vcmp.eq.f32.partialorder %v105_v33, inf  ;;  %v123_v48 = vand.u32 2147483648, %v105_v33 }
  0xb1   :  { %vm122_vm2 = vcmp.eq.f32.partialorder %v105_v33, 0.0 }
  0xb2   :  { %v110_v36 = vadd.f32 %v109_v35, %v108_v34 }
  0xb4   :  { %v111_v37 = vrot.slane %v110_v36, 1 }
  0xb6   :  { %v603_v38 = vpop.eup %602  ;;  %v112_v40 = vadd.f32 %v111_v37, %v110_v36 }
  0xb7   :  { %v114_v39 = vmul.f32 %v603_v38, %v105_v33 }
  0xb8   :  { %604 = vrsqrt.f32 %v112_v40  ;;  %vm132_vm3 = vcmp.eq.f32.partialorder %v112_v40, inf  ;;  %v135_v57 = vand.u32 2147483648, %v112_v40  ;;  %vm134_vm4 = vcmp.eq.f32.partialorder %v112_v40, 0.0 }
  0xb9   :  { %v115_v41 = vmul.f32 %v603_v38, %v114_v39 }
  0xbb   :  { %v116_v42 = vmul.f32 0.5, %v115_v41 }
  0xbd   :  { %v117_v43 = vsub.f32 1.5, %v116_v42 }
  0xbe   :  { %v605_v44 = vpop.eup %604 }
  0xbf   :  { %v118_v45 = vmul.f32 %v603_v38, %v117_v43  ;;  %v126_v46 = vmul.f32 %v605_v44, %v112_v40 }
  0xc1   :  { %v119_v47 = vmul.f32 %v118_v45, %v105_v33  ;;  %v127_v49 = vmul.f32 %v605_v44, %v126_v46 }
  0xc3   :  { %v121_v50 = vsel %vm120_vm1, %v105_v33, %v119_v47  ;;  %v128_v52 = vmul.f32 0.5, %v127_v49 }
  0xc4   :  { %v809_v51 = vsel %vm122_vm2, %v123_v48, %v121_v50 }
  0xc5   :  { %v137_v53 = vadd.f32 1e-08, %v809_v51  ;;  %v129_v54 = vsub.f32 1.5, %v128_v52 }
  0xc7   :  { %606 = vrcp.f32 %v137_v53  ;;  %v130_v55 = vmul.f32 %v605_v44, %v129_v54  ;;  %v150_v0 = vand.u32 2147483648, %v137_v53  ;;  %v148_v2 = vand.u32 2147483647, %v137_v53 }
  0xc8   :  { %vm144_vm6 = vweird.f32 %v137_v53 }
  0xc9   :  { %v131_v56 = vmul.f32 %v130_v55, %v112_v40  ;;  %v151_v5 = vor.u32 1.1754944e-38, %v150_v0  ;;  %vm149_vm8 = vcmp.eq.f32.partialorder %v148_v2, 8.507059e+37 }
  0xcb   :  { %v133_v58 = vsel %vm132_vm3, %v112_v40, %v131_v56 }
  0xcc   :  { %v812_v60 = vsel %vm134_vm4, %v135_v57, %v133_v58 }
  0xcd   :  { %v607_v59 = vpop.eup %606  ;;  %v138_v62 = vadd.f32 1e-08, %v812_v60 }
  0xce   :  { %v140_v61 = vmul.f32 %v607_v59, %v137_v53  ;;  %vm145_vm5 = vweird.f32 %v607_v59 }
  0xcf   :  { %608 = vrcp.f32 %v138_v62  ;;  %vm146_vm7 = vmor %vm144_vm6, %vm145_vm5  ;;  %v165_v15 = vand.u32 2147483648, %v138_v62  ;;  %v163_v18 = vand.u32 2147483647, %v138_v62  ;;  %vm159_vm10 = vweird.f32 %v138_v62 }
  0xd0   :  { %v141_v63 = vsub.f32 1.0, %v140_v61 }
  0xd1   :  { %v166_v22 = vor.u32 1.1754944e-38, %v165_v15  ;;  %vm164_vm12 = vcmp.eq.f32.partialorder %v163_v18, 8.507059e+37 }
  0xd2   :  { %v142_v1 = vmul.f32 %v607_v59, %v141_v63 }
  0xd4   :  { %v143_v3 = vadd.f32 %v607_v59, %v142_v1 }
  0xd5   :  { %v609_v6 = vpop.eup %608 }
  0xd6   :  { %v147_v7 = vsel %vm146_vm7, %v607_v59, %v143_v3  ;;  %v155_v10 = vmul.f32 %v609_v6, %v138_v62  ;;  %vm160_vm9 = vweird.f32 %v609_v6 }
  0xd7   :  { %v152_v9 = vsel %vm149_vm8, %v151_v5, %v147_v7  ;;  %vm161_vm11 = vmor %vm159_vm10, %vm160_vm9 }
  0xd8   :  { %v153_v11 = vmul.f32 %v152_v9, %v799_v20  ;;  %v156_v13 = vsub.f32 1.0, %v155_v10 }
  0xda   :  { %v169_v14 = vmul.f32 %v153_v11, %v153_v11  ;;  %v157_v17 = vmul.f32 %v609_v6, %v156_v13  ;;  %v594_v13 = vld [vmem:[%s956_s4] ss:$0 sm:$0xff] }
  0xdc   :  { %v171_v19 = vmin.f32 %v169_v14, 0.99  ;;  %v158_v21 = vadd.f32 %v609_v6, %v157_v17 }
  0xde   :  { %v173_v20 = vsub.f32 1.0, %v171_v19  ;;  %v162_v23 = vsel %vm161_vm11, %v609_v6, %v158_v21 }
  0xdf   :  { %v167_v25 = vsel %vm164_vm12, %v166_v22, %v162_v23 }
  0xe0   :  { %v175_v24 = vadd.f32 1e-08, %v173_v20  ;;  %v168_v27 = vmul.f32 %v167_v25, %v804_v26 }
  0xe2   :  { %v177_v28 = vadd.f32 %v175_v24, %v169_v14  ;;  %610 = vrsqrt.f32 %v175_v24  ;;  %v170_v29 = vmul.f32 %v168_v27, %v168_v27  ;;  %vm208_vm4 = vcmp.eq.f32.partialorder %v175_v24, inf }
  0xe3   :  { %v211_v2 = vand.u32 2147483648, %v175_v24  ;;  %vm210_vm5 = vcmp.eq.f32.partialorder %v175_v24, 0.0 }
  0xe4   :  { %612 = vrsqrt.f32 %v177_v28  ;;  %v172_v30 = vmin.f32 %v170_v29, 0.99  ;;  %vm185_vm14 = vweird.f32 %v177_v28 }
  0xe6   :  { %v174_v31 = vsub.f32 1.0, %v172_v30 }
  0xe8   :  { %v611_v32 = vpop.eup %610  ;;  %v176_v33 = vadd.f32 1e-08, %v174_v31 }
  0xe9   :  { %v202_v34 = vmul.f32 %v611_v32, %v175_v24 }
  0xea   :  { %v613_v35 = vpop.eup %612  ;;  %v178_v37 = vadd.f32 %v176_v33, %v170_v29  ;;  %614 = vrsqrt.f32 %v176_v33  ;;  %vm220_vm6 = vcmp.eq.f32.partialorder %v176_v33, inf  ;;  %v223_v8 = vand.u32 2147483648, %v176_v33 }
  0xeb   :  { %v180_v36 = vmul.f32 %v613_v35, %v177_v28  ;;  %v203_v38 = vmul.f32 %v611_v32, %v202_v34  ;;  %vm186_vm13 = vweird.f32 %v613_v35  ;;  %vm222_vm7 = vcmp.eq.f32.partialorder %v176_v33, 0.0 }
  0xec   :  { %616 = vrsqrt.f32 %v178_v37  ;;  %vm187_vm15 = vmor %vm185_vm14, %vm186_vm13  ;;  %vm195_vm2 = vweird.f32 %v178_v37 }
  0xed   :  { %v181_v39 = vmul.f32 %v613_v35, %v180_v36  ;;  %v204_v41 = vmul.f32 0.5, %v203_v38 }
  0xef   :  { %v182_v40 = vmul.f32 0.5, %v181_v39  ;;  %v205_v45 = vsub.f32 1.5, %v204_v41 }
  0xf0   :  { %v615_v26 = vpop.eup %614 }
  0xf1   :  { %v183_v42 = vsub.f32 1.5, %v182_v40  ;;  %v214_v46 = vmul.f32 %v615_v26, %v176_v33  ;;  %v206_v53 = vmul.f32 %v611_v32, %v205_v45 }
  0xf2   :  { %v617_v43 = vpop.eup %616 }
  0xf3   :  { %v184_v44 = vmul.f32 %v613_v35, %v183_v42  ;;  %v190_v47 = vmul.f32 %v617_v43, %v178_v37  ;;  %v215_v49 = vmul.f32 %v615_v26, %v214_v46  ;;  %vm196_vm1 = vweird.f32 %v617_v43 }
  0xf4   :  { %v207_v58 = vmul.f32 %v206_v53, %v175_v24  ;;  %vm197_vm3 = vmor %vm195_vm2, %vm196_vm1 }
  0xf5   :  { %v188_v48 = vsel %vm187_vm15, %v613_v35, %v184_v44  ;;  %v191_v52 = vmul.f32 %v617_v43, %v190_v47  ;;  %v216_v54 = vmul.f32 0.5, %v215_v49 }
  0xf6   :  { %v199_v50 = vmul.f32 %v188_v48, %v153_v11  ;;  %v209_v0 = vsel %vm208_vm4, %v175_v24, %v207_v58 }
  0xf7   :  { %v192_v55 = vmul.f32 0.5, %v191_v52  ;;  %v217_v59 = vsub.f32 1.5, %v216_v54  ;;  %v212_v4 = vsel %vm210_vm5, %v211_v2, %v209_v0  ;;  %vm436_vm5 = vcmask 1041409  }
  0xf8   :  { %v227_v56 = vmul.f32 %v199_v50, %v809_v51  ;;  %v225_v6 = vmul.f32 %v212_v4, %v188_v48  ;;  %v659_v4 = vmov 32.0  }
  0xf9   :  { %v193_v57 = vsub.f32 1.5, %v192_v55  ;;  %v218_v1 = vmul.f32 %v615_v26, %v217_v59 }
  0xfa   :  { %583 = vmatmul.msk.f32.vlgmr.msra.gmra.mxu1 %vm98_vm0, %v227_v56  ;;  %v229_v9 = vmul.f32 %v225_v6, %v809_v51 }
  0xfb   :  { %v194_v61 = vmul.f32 %v617_v43, %v193_v57  ;;  %v219_v5 = vmul.f32 %v218_v1, %v176_v33 }
  0xfd   :  { %v198_v62 = vsel %vm197_vm3, %v617_v43, %v194_v61  ;;  %v221_v7 = vsel %vm220_vm6, %v176_v33, %v219_v5  ;;  %vm501_vm6 = vcmask 254976  }
  0xfe   :  { %v200_v63 = vmul.f32 %v198_v62, %v168_v27  ;;  %v224_v10 = vsel %vm222_vm7, %v223_v8, %v221_v7 }
  0xff   :  { %v226_v11 = vmul.f32 %v224_v10, %v198_v62 }
 0x100   :  { %v228_v3 = vmul.f32 %v200_v63, %v812_v60 }
 0x101   :  { %v230_v12 = vmul.f32 %v226_v11, %v812_v60 }
 0x102   :  { %584 = vmatmul.msk.f32.gmra.mxu1 %vm98_vm0, %v228_v3 }
 0x10a   :  { %585 = vmatmul.msk.f32.gmra.mxu1 %vm98_vm0, %v229_v9 }
 0x112   :  { %586 = vmatmul.msk.f32.gmra.mxu1 %vm98_vm0, %v230_v12 }
 0x177   :  { %v268_v14 = vpop.f32.mrf.mxu1 }
 0x178   :  { %v269_v15 = vadd.f32 %v594_v13, %v268_v14 }
 0x17a   :  { %282 = vrot.lane.b32.xlu0 %v269_v15, %s658_s17 }
 0x17f   :  { %v271_v16 = vpop.f32.mrf.mxu1 }
 0x180   :  { %v272_v17 = vadd.f32 %v594_v13, %v271_v16 }
 0x182   :  { %284 = vrot.lane.b32.xlu0 %v272_v17, %s658_s17 }
 0x187   :  { %v274_v51 = vpop.f32.mrf.mxu1 }
 0x188   :  { %v275_v18 = vadd.f32 %v594_v13, %v274_v51 }
 0x18a   :  { %292 = vrot.lane.b32.xlu1 %v275_v18, %s658_s17 }
 0x18f   :  { %v277_v19 = vpop.f32.mrf.mxu1 }
 0x190   :  { %v278_v21 = vadd.f32 %v594_v13, %v277_v19 }
 0x192   :  { %294 = vrot.lane.b32.xlu1 %v278_v21, %s658_s17 }
 0x1ec   :  { %v283_v60 = vpop.permute.xlu0 %282 }
 0x1ed   :  { %v288_v22 = vmul.f32 %v283_v60, %v269_v15  ;;  %v304_v23 = vmul.f32 %v283_v60, %v275_v18 }
 0x1f4   :  { %v285_v29 = vpop.permute.xlu0 %284 }
 0x1f5   :  { %v289_v33 = vmul.f32 %v285_v29, %v272_v17  ;;  %v305_v35 = vmul.f32 %v285_v29, %v278_v21 }
 0x1fc   :  { %v293_v20 = vpop.permute.xlu1 %292 }
 0x1fd   :  { %v298_v24 = vmul.f32 %v293_v20, %v275_v18  ;;  %v302_v25 = vmul.f32 %v293_v20, %v269_v15 }
 0x1ff   :  { %v300_v27 = vsub.f32 %v288_v22, %v298_v24  ;;  %v306_v28 = vadd.f32 %v304_v23, %v302_v25  ;;  %v429_v22 = vld [vmem:[%s959_s7 + $0x18] sm:$0xff]  ;;  %v428_v23 = vld [vmem:[%s959_s7 + $0x10] sm:$0xff]  ;;  %v427_v24 = vld [vmem:[%s959_s7 + $0x8] sm:$0xff] }
 0x200   :  { %452 = vmatpush.msra.mxu2 %v429_v22  ;;  %v426_v25 = vld [vmem:[%s959_s7] sm:$0xff] }
 0x201   :  { %v308_v30 = vmul.f32 %v300_v27, %v300_v27  ;;  %v310_v31 = vmul.f32 %v306_v28, %v306_v28 }
 0x202   :  { %453 = vmatpush.msra.mxu2 %v428_v23 }
 0x203   :  { %v312_v32 = vadd.f32 %v310_v31, %v308_v30 }
 0x204   :  { %v295_v34 = vpop.permute.xlu1 %294  ;;  %454 = vmatpush.msra.mxu2 %v427_v24 }
 0x205   :  { %v314_v36 = vadd.f32 1e-08, %v312_v32  ;;  %v299_v37 = vmul.f32 %v295_v34, %v278_v21  ;;  %v303_v38 = vmul.f32 %v295_v34, %v272_v17 }
 0x206   :  { %455 = vmatpush.msra.mxu2 %v426_v25  ;;  %v463_v25 = vld [vmem:[%s961_s9 + $0x10] sm:$0xff] }
 0x207   :  { %v301_v39 = vsub.f32 %v289_v33, %v299_v37  ;;  %v307_v40 = vadd.f32 %v305_v35, %v303_v38  ;;  %618 = vrsqrt.f32 %v314_v36  ;;  %vm323_vm8 = vcmp.eq.f32.partialorder %v314_v36, inf }
 0x208   :  { %v326_v55 = vand.u32 2147483648, %v314_v36  ;;  %vm325_vm9 = vcmp.eq.f32.partialorder %v314_v36, 0.0 }
 0x209   :  { %v309_v41 = vmul.f32 %v301_v39, %v301_v39  ;;  %v311_v42 = vmul.f32 %v307_v40, %v307_v40  ;;  %v476_v39 = vld [vmem:[%s961_s9 + $0x78] sm:$0xff]  ;;  %v475_v40 = vld [vmem:[%s961_s9 + $0x70] sm:$0xff] }
 0x20a   :  { %481 = vmatpush.msra.mxu3 %v476_v39 }
 0x20b   :  { %v313_v26 = vadd.f32 %v311_v42, %v309_v41 }
 0x20c   :  { %482 = vmatpush.msra.mxu3 %v475_v40 }
 0x20d   :  { %v619_v43 = vpop.eup %618  ;;  %v315_v44 = vadd.f32 1e-08, %v313_v26  ;;  %v660_v26 = vmov 8.0  }
 0x20e   :  { %v317_v45 = vmul.f32 %v619_v43, %v314_v36 }
 0x20f   :  { %620 = vrsqrt.f32 %v315_v44  ;;  %vm335_vm10 = vcmp.eq.f32.partialorder %v315_v44, inf  ;;  %v338_v0 = vand.u32 2147483648, %v315_v44  ;;  %vm337_vm11 = vcmp.eq.f32.partialorder %v315_v44, 0.0 }
 0x210   :  { %v318_v46 = vmul.f32 %v619_v43, %v317_v45  ;;  %622 = vrcp.f32 %v659_v4  ;;  %v474_v45 = vld [vmem:[%s961_s9 + $0x68] sm:$0xff] }
 0x211   :  { %483 = vmatpush.msra.mxu3 %v474_v45 }
 0x212   :  { %v319_v47 = vmul.f32 0.5, %v318_v46 }
 0x214   :  { %v320_v48 = vsub.f32 1.5, %v319_v47 }
 0x215   :  { %v621_v49 = vpop.eup %620 }
 0x216   :  { %v321_v50 = vmul.f32 %v619_v43, %v320_v48  ;;  %v329_v52 = vmul.f32 %v621_v49, %v315_v44  ;;  %v623_v5 = vpop.eup %622  ;;  %v596_v43 = vld [vmem:[%s958_s6] ss:$0 sm:$0xff] }
 0x217   :  { %v347_v6 = vmul.f32 32.0, %v623_v5  ;;  %vm351_vm12 = vweird.f32 %v623_v5  ;;  %v473_v48 = vld [vmem:[%s961_s9 + $0x60] sm:$0xff] }
 0x218   :  { %v322_v53 = vmul.f32 %v321_v50, %v314_v36  ;;  %v330_v54 = vmul.f32 %v621_v49, %v329_v52  ;;  %v472_v52 = vld [vmem:[%s961_s9 + $0x58] sm:$0xff]  ;;  %484 = vmatpush.msra.mxu3 %v473_v48 }
 0x219   :  { %v348_v7 = vsub.f32 1.0, %v347_v6 }
 0x21a   :  { %v324_v56 = vsel %vm323_vm8, %v314_v36, %v322_v53  ;;  %v331_v57 = vmul.f32 0.5, %v330_v54  ;;  %v595_v36 = vld [vmem:[%s957_s5] ss:$0 sm:$0xff]  ;;  %485 = vmatpush.msra.mxu3 %v472_v52 }
 0x21b   :  { %v327_v58 = vsel %vm325_vm9, %v326_v55, %v324_v56  ;;  %v349_v8 = vmul.f32 %v623_v5, %v348_v7  ;;  %v471_v56 = vld [vmem:[%s961_s9 + $0x50] sm:$0xff] }
 0x21c   :  { %v340_v59 = vsel %vm98_vm0, %v327_v58, 0.0  ;;  %v332_v61 = vsub.f32 1.5, %v331_v57  ;;  %486 = vmatpush.msra.mxu3 %v471_v56  ;;  %v467_v7 = vld [vmem:[%s961_s9 + $0x30] sm:$0xff] }
 0x21d   :  { %341 = vadd.xlane.f32.xlu2 %v340_v59  ;;  %v350_v9 = vadd.f32 %v623_v5, %v349_v8 }
 0x21e   :  { %v333_v62 = vmul.f32 %v621_v49, %v332_v61 }
 0x21f   :  { %v842_v10 = vsel %vm351_vm12, %v623_v5, %v350_v9  ;;  %v468_v5 = vld [vmem:[%s961_s9 + $0x38] sm:$0xff] }
 0x220   :  { %v334_v63 = vmul.f32 %v333_v62, %v315_v44  ;;  %v470_v62 = vld [vmem:[%s961_s9 + $0x48] sm:$0xff] }
 0x221   :  { %487 = vmatpush.msra.mxu3 %v470_v62 }
 0x222   :  { %v336_v1 = vsel %vm335_vm10, %v315_v44, %v334_v63  ;;  %vm565_vm10 = vcmask 25600  }
 0x223   :  { %v339_v2 = vsel %vm337_vm11, %v338_v0, %v336_v1  ;;  %v469_v1 = vld [vmem:[%s961_s9 + $0x40] sm:$0xff] }
 0x224   :  { %v343_v3 = vsel %vm98_vm0, %v339_v2, 0.0  ;;  %488 = vmatpush.msra.mxu3 %v469_v1 }
 0x225   :  { %344 = vadd.xlane.f32.xlu2 %v343_v3 }
 0x226   :  { %489 = vmatpush.msra.mxu3 %v468_v5 }
 0x228   :  { %490 = vmatpush.msra.mxu3 %v467_v7 }
 0x290   :  { %v342_v11 = vpop.xlane.xlu2 %341 }
 0x291   :  { %v353_v12 = vmul.f32 %v842_v10, %v342_v11 }
 0x293   :  { %v355_v13 = vsub.f32 %v327_v58, %v353_v12  ;;  %v466_v12 = vld [vmem:[%s961_s9 + $0x28] sm:$0xff] }
 0x294   :  { %491 = vmatpush.msra.mxu3 %v466_v12 }
 0x295   :  { %v357_v14 = vmul.f32 %v355_v13, %v355_v13 }
 0x297   :  { %v359_v15 = vsel %vm98_vm0, %v357_v14, 0.0  ;;  %v465_v14 = vld [vmem:[%s961_s9 + $0x20] sm:$0xff] }
 0x298   :  { %360 = vadd.xlane.f32.xlu0 %v359_v15  ;;  %v345_v16 = vpop.xlane.xlu2 %344  ;;  %492 = vmatpush.msra.mxu3 %v465_v14 }
 0x299   :  { %v354_v17 = vmul.f32 %v842_v10, %v345_v16 }
 0x29b   :  { %v356_v51 = vsub.f32 %v339_v2, %v354_v17 }
 0x29d   :  { %v358_v18 = vmul.f32 %v356_v51, %v356_v51 }
 0x29f   :  { %v362_v19 = vsel %vm98_vm0, %v358_v18, 0.0 }
 0x2a0   :  { %363 = vadd.xlane.f32.xlu1 %v362_v19 }
 0x30b   :  { %v361_v21 = vpop.xlane.xlu0 %360 }
 0x30c   :  { %v365_v60 = vmul.f32 %v361_v21, %v842_v10 }
 0x30e   :  { %v367_v20 = vadd.f32 1e-05, %v365_v60 }
 0x310   :  { %624 = vrsqrt.f32 %v367_v20  ;;  %vm375_vm14 = vweird.f32 %v367_v20 }
 0x313   :  { %v364_v27 = vpop.xlane.xlu1 %363 }
 0x314   :  { %v366_v28 = vmul.f32 %v364_v27, %v842_v10  ;;  %v462_v27 = vld [vmem:[%s961_s9 + $0x8] sm:$0xff] }
 0x316   :  { %v625_v29 = vpop.eup %624  ;;  %v368_v30 = vadd.f32 1e-05, %v366_v28  ;;  %v461_v28 = vld [vmem:[%s961_s9] sm:$0xff] }
 0x317   :  { %v370_v31 = vmul.f32 %v625_v29, %v367_v20  ;;  %vm376_vm13 = vweird.f32 %v625_v29 }
 0x318   :  { %626 = vrsqrt.f32 %v368_v30  ;;  %vm377_vm15 = vmor %vm375_vm14, %vm376_vm13  ;;  %vm385_vm2 = vweird.f32 %v368_v30 }
 0x319   :  { %v371_v32 = vmul.f32 %v625_v29, %v370_v31  ;;  %628 = vrcp.f32 %v660_v26  ;;  %v536_v26 = vld [vmem:[%s965_s13 + $0x10] sm:$0xff] }
 0x31b   :  { %v372_v33 = vmul.f32 0.5, %v371_v32 }
 0x31d   :  { %v373_v34 = vsub.f32 1.5, %v372_v33  ;;  %v598_v33 = vld [vmem:[%s962_s10] ss:$0 sm:$0xff] }
 0x31e   :  { %v627_v35 = vpop.eup %626 }
 0x31f   :  { %v374_v37 = vmul.f32 %v625_v29, %v373_v34  ;;  %v380_v38 = vmul.f32 %v627_v35, %v368_v30  ;;  %vm386_vm1 = vweird.f32 %v627_v35  ;;  %v629_v53 = vpop.eup %628 }
 0x320   :  { %vm387_vm3 = vmor %vm385_vm2, %vm386_vm1  ;;  %v418_v61 = vmul.f32 8.0, %v629_v53  ;;  %vm422_vm4 = vweird.f32 %v629_v53 }
 0x321   :  { %v378_v41 = vsel %vm377_vm15, %v625_v29, %v374_v37  ;;  %v381_v42 = vmul.f32 %v627_v35, %v380_v38  ;;  %v597_v29 = vld [vmem:[%s960_s8] ss:$0 sm:$0xff] }
 0x322   :  { %v389_v44 = vmul.f32 %v378_v41, %v355_v13  ;;  %v419_v4 = vsub.f32 1.0, %v418_v61  ;;  %v601_v61 = vld [vmem:[%s966_s14] ss:$0 sm:$0xff] }
 0x323   :  { %v382_v46 = vmul.f32 0.5, %v381_v42  ;;  %v537_v42 = vld [vmem:[%s965_s13 + $0x18] sm:$0xff] }
 0x324   :  { %v395_v47 = vmul.f32 %v595_v36, %v389_v44  ;;  %v420_v11 = vmul.f32 %v629_v53, %v419_v4  ;;  %557 = vmatpush.msrb.mxu2 %v537_v42  ;;  %v534_v44 = vld [vmem:[%s965_s13] sm:$0xff] }
 0x325   :  { %v383_v49 = vsub.f32 1.5, %v382_v46 }
 0x326   :  { %v401_v50 = vadd.f32 %v596_v43, %v395_v47  ;;  %v421_v17 = vadd.f32 %v629_v53, %v420_v11  ;;  %558 = vmatpush.msrb.mxu2 %v536_v26 }
 0x327   :  { %v384_v54 = vmul.f32 %v627_v35, %v383_v49 }
 0x328   :  { %v403_v55 = vsel %vm98_vm0, %v401_v50, 0.0  ;;  %v423_v60 = vsel %vm422_vm4, %v629_v53, %v421_v17 }
 0x329   :  { %v388_v57 = vsel %vm387_vm3, %v627_v35, %v384_v54  ;;  %v404_v58 = vrot.slane %v403_v55, 4 }
 0x32a   :  { %v390_v59 = vmul.f32 %v388_v57, %v356_v51  ;;  %v464_v51 = vld [vmem:[%s961_s9 + $0x18] sm:$0xff] }
 0x32b   :  { %v405_v63 = vadd.f32 %v404_v58, %v403_v55  ;;  %493 = vmatpush.msra.mxu3 %v464_v51  ;;  %v599_v55 = vld [vmem:[%s963_s11] ss:$0 sm:$0xff]  ;;  %s574_s11 = sshll.u32 %s967_s15, 4  ;;  %s575_s11 = int_to_ptr.hbm [resolvable:$true] %s574_s11 }
 0x32c   :  { %v396_v0 = vmul.f32 %v595_v36, %v390_v59 }
 0x32d   :  { %v406_v2 = vrot.slane %v405_v63, 2  ;;  %494 = vmatpush.msra.mxu3 %v463_v25 }
 0x32e   :  { %v402_v3 = vadd.f32 %v596_v43, %v396_v0  ;;  %v535_v43 = vld [vmem:[%s965_s13 + $0x8] sm:$0xff] }
 0x32f   :  { %v407_v8 = vadd.f32 %v406_v2, %v405_v63  ;;  %495 = vmatpush.msra.mxu3 %v462_v27  ;;  %559 = vmatpush.msrb.mxu2 %v535_v43 }
 0x330   :  { %v410_v6 = vsel %vm98_vm0, %v402_v3, 0.0 }
 0x331   :  { %v411_v9 = vrot.slane %v410_v6, 4  ;;  %v408_v15 = vrot.slane %v407_v8, 1  ;;  %496 = vmatpush.msra.mxu3 %v461_v28  ;;  %560 = vmatpush.msrb.mxu2 %v534_v44 }
 0x333   :  { %v412_v13 = vadd.f32 %v411_v9, %v410_v6  ;;  %v409_v19 = vadd.f32 %v408_v15, %v407_v8 }
 0x335   :  { %v413_v16 = vrot.slane %v412_v13, 2  ;;  %v424_v22 = vmul.f32 %v423_v60, %v409_v19 }
 0x337   :  { %v414_v18 = vadd.f32 %v413_v16, %v412_v13 }
 0x339   :  { %v415_v21 = vrot.slane %v414_v18, 1 }
 0x33b   :  { %v416_v20 = vadd.f32 %v415_v21, %v414_v18 }
 0x33d   :  { %v425_v23 = vmul.f32 %v423_v60, %v416_v20 }
 0x33f   :  { %v437_v24 = vsel %vm436_vm5, %v425_v23, %v424_v22 }
 0x340   :  { %587 = vmatmul.msk.f32.vlgmr.msra.gmra.mxu2 %vm98_vm0, %v437_v24 }
 0x3c3   :  { %v457_v30 = vpop.f32.mrf.mxu2 }
 0x3c4   :  { %v458_v31 = vadd.f32 %v597_v29, %v457_v30 }
 0x3c6   :  { %v460_v32 = vmax.f32 %v458_v31, 0.0 }
 0x3c8   :  { %497 = vmatmul.f32.vlgmr.msra.gmra.mxu3 %v460_v32 }
 0x44b   :  { %v498_v34 = vpop.f32.mrf.mxu3 }
 0x44c   :  { %v499_v35 = vadd.f32 %v598_v33, %v498_v34 }
 0x44e   :  { %v502_v36 = vsel %vm501_vm6, %v499_v35, 0.0 }
 0x44f   :  { %503 = vadd.xlane.f32.xlu2 %v502_v36 }
 0x4c2   :  { %v504_v37 = vpop.xlane.xlu2 %503 }
 0x4c3   :  { %v505_v38 = vmul.f32 %v504_v37, %v842_v10 }
 0x4c5   :  { %v506_v39 = vsub.f32 %v499_v35, %v505_v38 }
 0x4c7   :  { %v507_v40 = vmul.f32 %v506_v39, %v506_v39 }
 0x4c9   :  { %v508_v41 = vsel %vm501_vm6, %v507_v40, 0.0 }
 0x4ca   :  { %509 = vadd.xlane.f32.xlu2 %v508_v41 }
 0x53d   :  { %v510_v45 = vpop.xlane.xlu2 %509 }
 0x53e   :  { %v511_v46 = vmul.f32 %v510_v45, %v842_v10  ;;  %v600_v10 = vld [vmem:[%s964_s12] ss:$0 sm:$0xff] }
 0x540   :  { %v512_v47 = vadd.f32 1e-05, %v511_v46 }
 0x542   :  { %630 = vrsqrt.f32 %v512_v47  ;;  %vm519_vm8 = vweird.f32 %v512_v47 }
 0x548   :  { %v631_v48 = vpop.eup %630 }
 0x549   :  { %v514_v49 = vmul.f32 %v631_v48, %v512_v47  ;;  %vm520_vm7 = vweird.f32 %v631_v48 }
 0x54a   :  { %vm521_vm9 = vmor %vm519_vm8, %vm520_vm7 }
 0x54b   :  { %v515_v50 = vmul.f32 %v631_v48, %v514_v49 }
 0x54d   :  { %v516_v52 = vmul.f32 0.5, %v515_v50 }
 0x54f   :  { %v517_v53 = vsub.f32 1.5, %v516_v52 }
 0x551   :  { %v518_v54 = vmul.f32 %v631_v48, %v517_v53 }
 0x553   :  { %v522_v56 = vsel %vm521_vm9, %v631_v48, %v518_v54 }
 0x554   :  { %v523_v57 = vmul.f32 %v522_v56, %v506_v39 }
 0x556   :  { %v528_v58 = vmul.f32 %v599_v55, %v523_v57 }
 0x558   :  { %v533_v59 = vadd.f32 %v600_v10, %v528_v58 }
 0x55a   :  { %588 = vmatmul.msk.f32.vlgmr.msrb.gmra.mxu2 %vm98_vm0, %v533_v59 }
 0x5dd   :  { %v562_v62 = vpop.f32.mrf.mxu2 }
 0x5de   :  { %v563_v63 = vadd.f32 %v601_v61, %v562_v62 }
 0x5e0   :  { %566 = vst.msk [vmem:[#allocation2] sm:$0x3] %vm565_vm10, %v563_v63 }
 0x5e1   :  { %577 = dma.vmem_to_hbm [thread:$0]  %s573_s26, 32, %s575_s11, [#allocation3]  }
 0x5e2   :  { %656 = dma.done.wait [#allocation3], 32  }
 0x5e3   :  { %657 = vsyncadd [#allocation3], 4294967264 }
 0x5e4   :  { %582 = vsyncpa [#allocation3], 1 }

</bundles_post_ra>
